<compile_context>
chip_gen: v6e
topology: v6e:2x2x1
jax: 0.10.0
libtpu: 0.0.40
codegen_flags: <defaults>
</compile_context>

<pallas_src>
import jax
import jax.numpy as jnp
from jax.experimental import pallas as pl
from jax.experimental.pallas import tpu as pltpu

D_IN, D_HID, D_OUT = 1024, 256, 128
TILE_R = 1024        # row tile (multiple of 16 -> layout-legal for bf16 and f32)
MIN_TILES = 2        # keep >=2 grid steps when possible (v7x megacore sharding)


def _round_up(x, m):
    return ((x + m - 1) // m) * m


def _tucker_mlp_kernel(x_ref, w1_ref, b1_ref, w2_ref, b2_ref, o_ref):
    # In-VMEM downcast of the activation tile: HBM sees a single f32 read of X.
    x = x_ref[...].astype(jnp.bfloat16)                        # [tile_r, 1024]
    # Two MXU matmuls (bf16 in, f32 accumulate) + f32 bias / EUP tanh.
    h = jnp.dot(x, w1_ref[...], preferred_element_type=jnp.float32)
    h = jnp.tanh(h + b1_ref[...])                              # [tile_r, 256] f32
    h = h.astype(w2_ref.dtype)                                 # back to bf16 for the MXU
    y = jnp.dot(h, w2_ref[...], preferred_element_type=jnp.float32)
    o_ref[...] = (y + b2_ref[...]).astype(o_ref.dtype)         # [tile_r, 128]


def _mlp_pallas(x2d, w1, b1, w2, b2, *, tile_r=TILE_R, out_dtype=jnp.bfloat16):
    """x2d: [rows, 1024] (f32) -> [rows, 128] (out_dtype)."""
    rows = x2d.shape[0]
    # Adaptive tile: big enough to amortize per-step overhead, small enough
    # that the parallel row axis has >= MIN_TILES steps for v7x's 2 TCs.
    tile_r = max(16, min(tile_r, _round_up(pl.cdiv(rows, MIN_TILES), 16)))
    n_tiles = pl.cdiv(rows, tile_r)

    flops = 2 * rows * (D_IN * D_HID + D_HID * D_OUT)
    bytes_accessed = (
        rows * D_IN * x2d.dtype.itemsize                       # f32 activation stream in
        + rows * D_OUT * jnp.dtype(out_dtype).itemsize         # bf16 output
        + w1.size * w1.dtype.itemsize + w2.size * w2.dtype.itemsize
        + b1.size * b1.dtype.itemsize + b2.size * b2.dtype.itemsize
    )

    return pl.pallas_call(
        _tucker_mlp_kernel,
        out_shape=jax.ShapeDtypeStruct((rows, D_OUT), out_dtype),
        grid_spec=pltpu.PrefetchScalarGridSpec(
            num_scalar_prefetch=0,
            grid=(n_tiles,),
            in_specs=[
                pl.BlockSpec((tile_r, D_IN), lambda i: (i, 0)),   # activations: tiled
                pl.BlockSpec((D_IN, D_HID), lambda i: (0, 0)),    # w1: resident
                pl.BlockSpec((1, D_HID), lambda i: (0, 0)),       # b1: resident
                pl.BlockSpec((D_HID, D_OUT), lambda i: (0, 0)),   # w2: resident
                pl.BlockSpec((1, D_OUT), lambda i: (0, 0)),       # b2: resident
            ],
            out_specs=pl.BlockSpec((tile_r, D_OUT), lambda i: (i, 0)),
        ),
        compiler_params=pltpu.CompilerParams(
            dimension_semantics=("parallel",),          # megacore sharding on v7x
            vmem_limit_bytes=32 * 1024 * 1024,          # explicit: v5e default is 16 MiB
        ),
        cost_estimate=pl.CostEstimate(
            flops=flops,
            transcendentals=rows * D_HID,               # tanh
            bytes_accessed=bytes_accessed,
        ),
    )(x2d, w1, b1, w2, b2)


def tucker_forward(X, w1, b1, w2, b2, *, out_dtype=jnp.bfloat16):
    """X: [B, 3, 1024] f32 -> (anchor, pos, neg), each [B, 128] (out_dtype).

    out_dtype defaults to bf16 (trims ~10% of HBM bytes); pass jnp.float32 for
    exact PyTorch output dtype parity.
    """
    B = X.shape[0]
    rows = 3 * B
    # Rows are independent through the MLP: reshape directly, keep f32 (the
    # bf16 cast happens in-kernel so X is read from HBM exactly once).
    x_flat = X.reshape(rows, D_IN)
    w1b = w1.astype(jnp.bfloat16)
    w2b = w2.astype(jnp.bfloat16)
    b1f = b1.astype(jnp.float32)
    b2f = b2.astype(jnp.float32)

    out = _mlp_pallas(x_flat, w1b, b1f, w2b, b2f, out_dtype=out_dtype)  # [3B, 128]
    out = out.reshape(B, 3, D_OUT)
    return out[:, 0, :], out[:, 1, :], out[:, 2, :]


if __name__ == "__main__":
    key = jax.random.PRNGKey(0)
    k_x, k_w1, k_b1, k_w2, k_b2 = jax.random.split(key, 5)

    B = 2
    X = jax.random.normal(k_x, (B, 3, D_IN), dtype=jnp.float32)

    # Deterministic synthetic parameters (stored as [in, out], i.e. W^T).
    w1 = jax.random.normal(k_w1, (D_IN, D_HID), dtype=jnp.float32) * (1.0 / jnp.sqrt(D_IN))
    b1 = jax.random.normal(k_b1, (1, D_HID), dtype=jnp.float32) * 0.01
    w2 = jax.random.normal(k_w2, (D_HID, D_OUT), dtype=jnp.float32) * (1.0 / jnp.sqrt(D_HID))
    b2 = jax.random.normal(k_b2, (1, D_OUT), dtype=jnp.float32) * 0.01

    anchor, pos, neg = jax.jit(tucker_forward)(X, w1, b1, w2, b2)
    jax.block_until_ready((anchor, pos, neg))

    # Pure-JAX f32 reference check (tolerance loosened for the bf16 MXU path
    # and bf16 output; accumulation stays f32 inside the kernel).
    def ref_mlp(x):
        return jnp.tanh(x @ w1 + b1) @ w2 + b2

    ref = (ref_mlp(X[:, 0, :]), ref_mlp(X[:, 1, :]), ref_mlp(X[:, 2, :]))
    for got, want in zip((anchor, pos, neg), ref):
        assert got.shape == (B, D_OUT)
        assert jnp.allclose(got.astype(jnp.float32), want, atol=5e-2, rtol=5e-2)

    print("KERNEL_OK")
</pallas_src>

<mosaic_0001>
module attributes {stable_mosaic.version = 11 : i64} {
  func.func @_tucker_mlp_kernel(%arg0: i32, %arg1: memref<16x1024xf32, #tpu.memory_space<vmem>>, %arg2: memref<1024x256xbf16, #tpu.memory_space<vmem>>, %arg3: memref<1x256xf32, #tpu.memory_space<vmem>>, %arg4: memref<256x128xbf16, #tpu.memory_space<vmem>>, %arg5: memref<1x128xf32, #tpu.memory_space<vmem>>, %arg6: memref<16x128xbf16, #tpu.memory_space<vmem>>) attributes {dimension_semantics = [#tpu.dimension_semantics<parallel>], iteration_bounds = array<i64: 1>, scalar_prefetch = 0 : i64, scratch_operands = 0 : i64, tpu.core_type = #tpu.core_type<tc>, window_params = [{transform_indices = @transform_0, window_bounds = array<i64: 16, 1024>}, {pipeline_mode = #tpu.pipeline_mode<synchronous>, transform_indices = @transform_1, window_bounds = array<i64: 1024, 256>}, {pipeline_mode = #tpu.pipeline_mode<synchronous>, transform_indices = @transform_2, window_bounds = array<i64: 1, 256>}, {pipeline_mode = #tpu.pipeline_mode<synchronous>, transform_indices = @transform_3, window_bounds = array<i64: 256, 128>}, {pipeline_mode = #tpu.pipeline_mode<synchronous>, transform_indices = @transform_4, window_bounds = array<i64: 1, 128>}, {transform_indices = @transform_5, window_bounds = array<i64: 16, 128>}]} {
    %c0 = arith.constant 0 : index
    %c0_0 = arith.constant 0 : index
    %0 = vector.load %arg1[%c0, %c0_0] : memref<16x1024xf32, #tpu.memory_space<vmem>>, vector<16x1024xf32>
    %1 = arith.truncf %0 : vector<16x1024xf32> to vector<16x1024xbf16>
    %c0_1 = arith.constant 0 : index
    %c0_2 = arith.constant 0 : index
    %2 = vector.load %arg2[%c0_1, %c0_2] : memref<1024x256xbf16, #tpu.memory_space<vmem>>, vector<1024x256xbf16>
    %cst = arith.constant dense<0.000000e+00> : vector<16x256xf32>
    %3 = tpu.matmul %1, %2, %cst {dimension_numbers = #tpu.dot_dimension_numbers<[1], [0], [0], [1], [0, 0, 1, 1], [], []>} : vector<16x1024xbf16>, vector<1024x256xbf16>, vector<16x256xf32> -> vector<16x256xf32>
    %c0_3 = arith.constant 0 : index
    %c0_4 = arith.constant 0 : index
    %4 = vector.load %arg3[%c0_3, %c0_4] : memref<1x256xf32, #tpu.memory_space<vmem>>, vector<1x256xf32>
    %5 = vector.broadcast %4 : vector<1x256xf32> to vector<16x256xf32>
    %6 = arith.addf %3, %5 : vector<16x256xf32>
    %7 = math.tanh %6 : vector<16x256xf32>
    %8 = arith.truncf %7 : vector<16x256xf32> to vector<16x256xbf16>
    %c0_5 = arith.constant 0 : index
    %c0_6 = arith.constant 0 : index
    %9 = vector.load %arg4[%c0_5, %c0_6] : memref<256x128xbf16, #tpu.memory_space<vmem>>, vector<256x128xbf16>
    %cst_7 = arith.constant dense<0.000000e+00> : vector<16x128xf32>
    %10 = tpu.matmul %8, %9, %cst_7 {dimension_numbers = #tpu.dot_dimension_numbers<[1], [0], [0], [1], [0, 0, 1, 1], [], []>} : vector<16x256xbf16>, vector<256x128xbf16>, vector<16x128xf32> -> vector<16x128xf32>
    %c0_8 = arith.constant 0 : index
    %c0_9 = arith.constant 0 : index
    %11 = vector.load %arg5[%c0_8, %c0_9] : memref<1x128xf32, #tpu.memory_space<vmem>>, vector<1x128xf32>
    %12 = vector.broadcast %11 : vector<1x128xf32> to vector<16x128xf32>
    %13 = arith.addf %10, %12 : vector<16x128xf32>
    %14 = arith.truncf %13 : vector<16x128xf32> to vector<16x128xbf16>
    %c0_10 = arith.constant 0 : index
    %c0_11 = arith.constant 0 : index
    %15 = vector.load %arg6[%c0_10, %c0_11] : memref<16x128xbf16, #tpu.memory_space<vmem>>, vector<16x128xbf16>
    tpu.vector_store %arg6[%c0_10, %c0_11], %14 {strides = array<i32>} : memref<16x128xbf16, #tpu.memory_space<vmem>>, vector<16x128xbf16>,
    return
  }
  func.func @transform_0(%arg0: i32) -> (i32, i32) {
    %c0_i32 = arith.constant 0 : i32
    %c0_i32_0 = arith.constant 0 : i32
    return %arg0, %c0_i32 : i32, i32
  }
  func.func @transform_1(%arg0: i32) -> (i32, i32) {
    %c0_i32 = arith.constant 0 : i32
    %c0_i32_0 = arith.constant 0 : i32
    %c0_i32_1 = arith.constant 0 : i32
    return %c0_i32, %c0_i32_0 : i32, i32
  }
  func.func @transform_2(%arg0: i32) -> (i32, i32) {
    %c0_i32 = arith.constant 0 : i32
    %c0_i32_0 = arith.constant 0 : i32
    %c0_i32_1 = arith.constant 0 : i32
    return %c0_i32, %c0_i32_0 : i32, i32
  }
  func.func @transform_3(%arg0: i32) -> (i32, i32) {
    %c0_i32 = arith.constant 0 : i32
    %c0_i32_0 = arith.constant 0 : i32
    %c0_i32_1 = arith.constant 0 : i32
    return %c0_i32, %c0_i32_0 : i32, i32
  }
  func.func @transform_4(%arg0: i32) -> (i32, i32) {
    %c0_i32 = arith.constant 0 : i32
    %c0_i32_0 = arith.constant 0 : i32
    %c0_i32_1 = arith.constant 0 : i32
    return %c0_i32, %c0_i32_0 : i32, i32
  }
  func.func @transform_5(%arg0: i32) -> (i32, i32) {
    %c0_i32 = arith.constant 0 : i32
    %c0_i32_0 = arith.constant 0 : i32
    return %arg0, %c0_i32 : i32, i32
  }
}

</mosaic_0001>

<bundles_post_ra>
// kernel: tucker_forward.1
= control target key start
LH: loop header
LB: loop body
LE: loop exit
PB: predicated region body
PF: predicated region fallthrough
CT: control target
= control target key end

     0   :  { %s2141_s0 = inlined_call_operand.vmem [shape: f32[6,1024], index: 0, kind: input, shape index: {}]   ;;  %s2142_s1 = inlined_call_operand.vmem [shape: bf16[1024,256], index: 1, kind: input, shape index: {}]   ;;  %s2143_s2 = inlined_call_operand.vmem [shape: f32[1,256], index: 2, kind: input, shape index: {}]   ;;  %s2144_s3 = inlined_call_operand.vmem [shape: bf16[256,128], index: 3, kind: input, shape index: {}]   ;;  %s2145_s4 = inlined_call_operand.vmem [shape: f32[1,128], index: 4, kind: input, shape index: {}]   ;;  %s2146_s5 = inlined_call_operand.vmem [shape: bf16[6,128], index: 5, kind: output, shape index: {}]  }
   0x1   :  { %v1406_v0 = vld [vmem:[%s2142_s1 + $0x74] ss:$8 sps:$4 sm:$0xff]   ;;  %v1410_v2 = vld [vmem:[%s2142_s1 + $0x70] ss:$8 sps:$4 sm:$0xff]   ;;  %v1412_v4 = vld [vmem:[%s2142_s1 + $0x64] ss:$8 sps:$4 sm:$0xff]  }
   0x2   :  { %v1408_v1 = vld [vmem:[%s2142_s1 + $0x174] ss:$8 sps:$4 sm:$0xff]   ;;  %825 = vmatprep.subr.bf16.mxu0 %v1406_v0  ;;  %v1411_v3 = vld [vmem:[%s2142_s1 + $0x170] ss:$8 sps:$4 sm:$0xff]   ;;  %v1414_v5 = vld [vmem:[%s2142_s1 + $0x164] ss:$8 sps:$4 sm:$0xff]  }
   0x3   :  { %868 = vmatprep.subr.bf16.mxu1 %v1408_v1  ;;  %826 = vmatpush1.bf16.msra.mxu0 %v1410_v2  ;;  %v1416_v6 = vld [vmem:[%s2142_s1 + $0x60] ss:$8 sps:$4 sm:$0xff]   ;;  %v1418_v8 = vld [vmem:[%s2142_s1 + $0x54] ss:$8 sps:$4 sm:$0xff]   ;;  %v1422_v10 = vld [vmem:[%s2142_s1 + $0x50] ss:$8 sps:$4 sm:$0xff]  }
   0x4   :  { %869 = vmatpush1.bf16.msra.mxu1 %v1411_v3  ;;  %827 = vmatprep.subr.bf16.mxu0 %v1412_v4  ;;  %v1417_v7 = vld [vmem:[%s2142_s1 + $0x160] ss:$8 sps:$4 sm:$0xff]   ;;  %v1420_v9 = vld [vmem:[%s2142_s1 + $0x154] ss:$8 sps:$4 sm:$0xff]   ;;  %v1423_v11 = vld [vmem:[%s2142_s1 + $0x150] ss:$8 sps:$4 sm:$0xff]  }
   0x5   :  { %870 = vmatprep.subr.bf16.mxu1 %v1414_v5  ;;  %v1424_v12 = vld [vmem:[%s2142_s1 + $0x44] ss:$8 sps:$4 sm:$0xff]   ;;  %v1428_v14 = vld [vmem:[%s2142_s1 + $0x40] ss:$8 sps:$4 sm:$0xff]   ;;  %v1430_v16 = vld [vmem:[%s2142_s1 + $0x34] ss:$8 sps:$4 sm:$0xff]  }
   0x6   :  { %v1426_v13 = vld [vmem:[%s2142_s1 + $0x144] ss:$8 sps:$4 sm:$0xff]   ;;  %v1429_v15 = vld [vmem:[%s2142_s1 + $0x140] ss:$8 sps:$4 sm:$0xff]   ;;  %v1432_v17 = vld [vmem:[%s2142_s1 + $0x134] ss:$8 sps:$4 sm:$0xff]  }
   0x7   :  { %828 = vmatpush1.bf16.msra.mxu0 %v1416_v6  ;;  %v1434_v18 = vld [vmem:[%s2142_s1 + $0x30] ss:$8 sps:$4 sm:$0xff]   ;;  %v1436_v20 = vld [vmem:[%s2142_s1 + $0x24] ss:$8 sps:$4 sm:$0xff]   ;;  %v1440_v22 = vld [vmem:[%s2142_s1 + $0x20] ss:$8 sps:$4 sm:$0xff]  }
   0x8   :  { %871 = vmatpush1.bf16.msra.mxu1 %v1417_v7  ;;  %829 = vmatprep.subr.bf16.mxu0 %v1418_v8  ;;  %v1435_v19 = vld [vmem:[%s2142_s1 + $0x130] ss:$8 sps:$4 sm:$0xff]   ;;  %v1438_v21 = vld [vmem:[%s2142_s1 + $0x124] ss:$8 sps:$4 sm:$0xff]   ;;  %v1441_v23 = vld [vmem:[%s2142_s1 + $0x120] ss:$8 sps:$4 sm:$0xff]  }
   0x9   :  { %872 = vmatprep.subr.bf16.mxu1 %v1420_v9  ;;  %v1442_v24 = vld [vmem:[%s2142_s1 + $0x14] ss:$8 sps:$4 sm:$0xff]   ;;  %v1446_v26 = vld [vmem:[%s2142_s1 + $0x10] ss:$8 sps:$4 sm:$0xff]   ;;  %v1448_v28 = vld [vmem:[%s2142_s1 + $0x4] ss:$8 sps:$4 sm:$0xff]  }
   0xa   :  { %v1444_v25 = vld [vmem:[%s2142_s1 + $0x114] ss:$8 sps:$4 sm:$0xff]   ;;  %v1447_v27 = vld [vmem:[%s2142_s1 + $0x110] ss:$8 sps:$4 sm:$0xff]   ;;  %v1450_v29 = vld [vmem:[%s2142_s1 + $0x104] ss:$8 sps:$4 sm:$0xff]  }
   0xb   :  { %830 = vmatpush1.bf16.msra.mxu0 %v1422_v10  ;;  %v1452_v30 = vld [vmem:[%s2142_s1] ss:$8 sps:$4 sm:$0xff]   ;;  %v1454_v32 = vld [vmem:[%s2142_s1 + $0xf4] ss:$8 sps:$4 sm:$0xff]   ;;  %v1458_v34 = vld [vmem:[%s2142_s1 + $0xf0] ss:$8 sps:$4 sm:$0xff]  }
   0xc   :  { %873 = vmatpush1.bf16.msra.mxu1 %v1423_v11  ;;  %831 = vmatprep.subr.bf16.mxu0 %v1424_v12  ;;  %v1453_v31 = vld [vmem:[%s2142_s1 + $0x100] ss:$8 sps:$4 sm:$0xff]   ;;  %v1456_v33 = vld [vmem:[%s2142_s1 + $0x1f4] ss:$8 sps:$4 sm:$0xff]   ;;  %v1459_v35 = vld [vmem:[%s2142_s1 + $0x1f0] ss:$8 sps:$4 sm:$0xff]  }
   0xd   :  { %874 = vmatprep.subr.bf16.mxu1 %v1426_v13  ;;  %v1460_v36 = vld [vmem:[%s2142_s1 + $0xe4] ss:$8 sps:$4 sm:$0xff]   ;;  %v1464_v38 = vld [vmem:[%s2142_s1 + $0xe0] ss:$8 sps:$4 sm:$0xff]   ;;  %v1466_v40 = vld [vmem:[%s2142_s1 + $0xd4] ss:$8 sps:$4 sm:$0xff]  }
   0xe   :  { %v1462_v37 = vld [vmem:[%s2142_s1 + $0x1e4] ss:$8 sps:$4 sm:$0xff]   ;;  %v1465_v39 = vld [vmem:[%s2142_s1 + $0x1e0] ss:$8 sps:$4 sm:$0xff]   ;;  %v1468_v41 = vld [vmem:[%s2142_s1 + $0x1d4] ss:$8 sps:$4 sm:$0xff]  }
   0xf   :  { %832 = vmatpush1.bf16.msra.mxu0 %v1428_v14  ;;  %v1470_v42 = vld [vmem:[%s2142_s1 + $0xd0] ss:$8 sps:$4 sm:$0xff]   ;;  %v1472_v44 = vld [vmem:[%s2142_s1 + $0xc4] ss:$8 sps:$4 sm:$0xff]   ;;  %v1476_v50 = vld [vmem:[%s2142_s1 + $0xc0] ss:$8 sps:$4 sm:$0xff]  }
  0x10   :  { %875 = vmatpush1.bf16.msra.mxu1 %v1429_v15  ;;  %833 = vmatprep.subr.bf16.mxu0 %v1430_v16  ;;  %v1471_v43 = vld [vmem:[%s2142_s1 + $0x1d0] ss:$8 sps:$4 sm:$0xff]   ;;  %v1474_v45 = vld [vmem:[%s2142_s1 + $0x1c4] ss:$8 sps:$4 sm:$0xff]   ;;  %v1477_v51 = vld [vmem:[%s2142_s1 + $0x1c0] ss:$8 sps:$4 sm:$0xff]  }
  0x11   :  { %876 = vmatprep.subr.bf16.mxu1 %v1432_v17  ;;  %v22_v46 = vld [vmem:[%s2141_s0 + $0x8] sm:$0xff]  ;;  %v24_v48 = vld [vmem:[%s2141_s0 + $0x18] sm:$0xff]  ;;  %v21_v6 = vld [vmem:[%s2141_s0] sm:$0xff] }
  0x12   :  { %v30_v47 = vld [vmem:[%s2141_s0 + $0x48] sm:$0xff]  ;;  %v32_v49 = vld [vmem:[%s2141_s0 + $0x58] sm:$0xff]  ;;  %v29_v7 = vld [vmem:[%s2141_s0 + $0x40] sm:$0xff] }
  0x13   :  { %834 = vmatpush1.bf16.msra.mxu0 %v1434_v18  ;;  %v1478_v52 = vld [vmem:[%s2142_s1 + $0xb4] ss:$8 sps:$4 sm:$0xff]   ;;  %v38_v53 = vpack.c.bf16 %v30_v47, %v22_v46  ;;  %v40_v54 = vpack.c.bf16 %v32_v49, %v24_v48  ;;  %v1482_v56 = vld [vmem:[%s2142_s1 + $0xb0] ss:$8 sps:$4 sm:$0xff]   ;;  %v1484_v58 = vld [vmem:[%s2142_s1 + $0xa4] ss:$8 sps:$4 sm:$0xff]   ;;  %v37_v12 = vpack.c.bf16 %v29_v7, %v21_v6 }
  0x14   :  { %877 = vmatpush1.bf16.msra.mxu1 %v1435_v19  ;;  %835 = vmatprep.subr.bf16.mxu0 %v1436_v20  ;;  %v1480_v55 = vld [vmem:[%s2142_s1 + $0x1b4] ss:$8 sps:$4 sm:$0xff]   ;;  %v1483_v57 = vld [vmem:[%s2142_s1 + $0x1b0] ss:$8 sps:$4 sm:$0xff]   ;;  %v1486_v59 = vld [vmem:[%s2142_s1 + $0x1a4] ss:$8 sps:$4 sm:$0xff]  }
  0x15   :  { %878 = vmatprep.subr.bf16.mxu1 %v1438_v21  ;;  %857 = vmatprep.mubr.bf16.mxu0 %v38_v53  ;;  %v1488_v60 = vld [vmem:[%s2142_s1 + $0xa0] ss:$8 sps:$4 sm:$0xff]   ;;  %v1490_v62 = vld [vmem:[%s2142_s1 + $0x94] ss:$8 sps:$4 sm:$0xff]   ;;  %v1494_v0 = vld [vmem:[%s2142_s1 + $0x90] ss:$8 sps:$4 sm:$0xff]  }
  0x16   :  { %900 = vmatprep.mubr.bf16.mxu1 %v40_v54  ;;  %v1489_v61 = vld [vmem:[%s2142_s1 + $0x1a0] ss:$8 sps:$4 sm:$0xff]   ;;  %v1492_v63 = vld [vmem:[%s2142_s1 + $0x194] ss:$8 sps:$4 sm:$0xff]   ;;  %v1495_v1 = vld [vmem:[%s2142_s1 + $0x190] ss:$8 sps:$4 sm:$0xff]  }
  0x17   :  { %836 = vmatpush1.bf16.msra.mxu0 %v1440_v22  ;;  %v1496_v2 = vld [vmem:[%s2142_s1 + $0x84] ss:$8 sps:$4 sm:$0xff]   ;;  %v1500_v4 = vld [vmem:[%s2142_s1 + $0x80] ss:$8 sps:$4 sm:$0xff]   ;;  %v23_v8 = vld [vmem:[%s2141_s0 + $0x10] sm:$0xff] }
  0x18   :  { %879 = vmatpush1.bf16.msra.mxu1 %v1441_v23  ;;  %837 = vmatprep.subr.bf16.mxu0 %v1442_v24  ;;  %v1498_v3 = vld [vmem:[%s2142_s1 + $0x184] ss:$8 sps:$4 sm:$0xff]   ;;  %v1501_v5 = vld [vmem:[%s2142_s1 + $0x180] ss:$8 sps:$4 sm:$0xff]   ;;  %v31_v9 = vld [vmem:[%s2141_s0 + $0x50] sm:$0xff] }
  0x19   :  { %880 = vmatprep.subr.bf16.mxu1 %v1444_v25  ;;  %v1504_v10 = vld [vmem:[%s2142_s1 + $0x274] ss:$8 sps:$4 sm:$0xff]   ;;  %v39_v13 = vpack.c.bf16 %v31_v9, %v23_v8  ;;  %v1502_v14 = vld [vmem:[%s2142_s1 + $0x270] ss:$8 sps:$4 sm:$0xff]   ;;  %v1510_v16 = vld [vmem:[%s2142_s1 + $0x264] ss:$8 sps:$4 sm:$0xff]  }
  0x1a   :  { %v1507_v11 = vld [vmem:[%s2142_s1 + $0x374] ss:$8 sps:$4 sm:$0xff]   ;;  %v1505_v15 = vld [vmem:[%s2142_s1 + $0x370] ss:$8 sps:$4 sm:$0xff]   ;;  %v1513_v17 = vld [vmem:[%s2142_s1 + $0x364] ss:$8 sps:$4 sm:$0xff]  }
  0x1b   :  { %838 = vmatpush1.bf16.msra.mxu0 %v1446_v26  ;;  %v1508_v18 = vld [vmem:[%s2142_s1 + $0x260] ss:$8 sps:$4 sm:$0xff]   ;;  %v1516_v20 = vld [vmem:[%s2142_s1 + $0x254] ss:$8 sps:$4 sm:$0xff]   ;;  %v1514_v22 = vld [vmem:[%s2142_s1 + $0x250] ss:$8 sps:$4 sm:$0xff]  }
  0x1c   :  { %881 = vmatpush1.bf16.msra.mxu1 %v1447_v27  ;;  %839 = vmatprep.subr.bf16.mxu0 %v1448_v28  ;;  %v1511_v19 = vld [vmem:[%s2142_s1 + $0x360] ss:$8 sps:$4 sm:$0xff]   ;;  %v1519_v21 = vld [vmem:[%s2142_s1 + $0x354] ss:$8 sps:$4 sm:$0xff]   ;;  %v1517_v23 = vld [vmem:[%s2142_s1 + $0x350] ss:$8 sps:$4 sm:$0xff]  }
  0x1d   :  { %882 = vmatprep.subr.bf16.mxu1 %v1450_v29  ;;  %v1522_v24 = vld [vmem:[%s2142_s1 + $0x244] ss:$8 sps:$4 sm:$0xff]   ;;  %v1520_v26 = vld [vmem:[%s2142_s1 + $0x240] ss:$8 sps:$4 sm:$0xff]   ;;  %v1528_v28 = vld [vmem:[%s2142_s1 + $0x234] ss:$8 sps:$4 sm:$0xff]  }
  0x1e   :  { %v1525_v25 = vld [vmem:[%s2142_s1 + $0x344] ss:$8 sps:$4 sm:$0xff]   ;;  %v1523_v27 = vld [vmem:[%s2142_s1 + $0x340] ss:$8 sps:$4 sm:$0xff]   ;;  %v1531_v29 = vld [vmem:[%s2142_s1 + $0x334] ss:$8 sps:$4 sm:$0xff]  }
  0x1f   :  { %840 = vmatpush1.bf16.msra.mxu0 %v1452_v30  ;;  %v1526_v30 = vld [vmem:[%s2142_s1 + $0x230] ss:$8 sps:$4 sm:$0xff]   ;;  %v1544_v47 = vld [vmem:[%s2142_s1 + $0x200] ss:$8 sps:$4 sm:$0xff]   ;;  %v1558_v54 = vld [vmem:[%s2142_s1 + $0x2e4] ss:$8 sps:$4 sm:$0xff]  }
  0x20   :  { %883 = vmatpush1.bf16.msra.mxu1 %v1453_v31  ;;  %841 = vmatprep.subr.bf16.mxu0 %v1454_v32  ;;  %v1529_v31 = vld [vmem:[%s2142_s1 + $0x330] ss:$8 sps:$4 sm:$0xff]   ;;  %v1534_v32 = vld [vmem:[%s2142_s1 + $0x224] ss:$8 sps:$4 sm:$0xff]   ;;  %v1547_v48 = vld [vmem:[%s2142_s1 + $0x300] ss:$8 sps:$4 sm:$0xff]  }
  0x21   :  { %884 = vmatprep.subr.bf16.mxu1 %v1456_v33  ;;  %v1537_v33 = vld [vmem:[%s2142_s1 + $0x324] ss:$8 sps:$4 sm:$0xff]   ;;  %v36_v46 = vld [vmem:[%s2141_s0 + $0x78] sm:$0xff]  ;;  %v1580_v8 = vld [vmem:[%s2142_s1 + $0x2a0] ss:$8 sps:$4 sm:$0xff]  }
  0x22   :  { %v1553_v53 = vld [vmem:[%s2142_s1 + $0x3f0] ss:$8 sps:$4 sm:$0xff]   ;;  %v1582_v6 = vld [vmem:[%s2142_s1 + $0x2a4] ss:$8 sps:$4 sm:$0xff]   ;;  %v1583_v9 = vld [vmem:[%s2142_s1 + $0x3a0] ss:$8 sps:$4 sm:$0xff]  }
  0x23   :  { %842 = vmatpush2.bf16.msra.mxu0 %v1458_v34  ;;  %v1532_v34 = vld [vmem:[%s2142_s1 + $0x220] ss:$8 sps:$4 sm:$0xff]   ;;  %v1585_v7 = vld [vmem:[%s2142_s1 + $0x3a4] ss:$8 sps:$4 sm:$0xff]  }
  0x24   :  { %885 = vmatpush2.bf16.msra.mxu1 %v1459_v35  ;;  %843 = vmatprep.subr.bf16.mxu0 %v1460_v36  ;;  %v1535_v35 = vld [vmem:[%s2142_s1 + $0x320] ss:$8 sps:$4 sm:$0xff]   ;;  %v1540_v36 = vld [vmem:[%s2142_s1 + $0x214] ss:$8 sps:$4 sm:$0xff]  }
  0x25   :  { %886 = vmatprep.subr.bf16.mxu1 %v1462_v37  ;;  %v1543_v37 = vld [vmem:[%s2142_s1 + $0x314] ss:$8 sps:$4 sm:$0xff]  }
  0x27   :  { %844 = vmatpush2.bf16.msra.mxu0 %v1464_v38  ;;  %v1538_v38 = vld [vmem:[%s2142_s1 + $0x210] ss:$8 sps:$4 sm:$0xff]  }
  0x28   :  { %887 = vmatpush2.bf16.msra.mxu1 %v1465_v39  ;;  %845 = vmatprep.subr.bf16.mxu0 %v1466_v40  ;;  %v1541_v39 = vld [vmem:[%s2142_s1 + $0x310] ss:$8 sps:$4 sm:$0xff]   ;;  %v26_v40 = vld [vmem:[%s2141_s0 + $0x28] sm:$0xff] }
  0x29   :  { %888 = vmatprep.subr.bf16.mxu1 %v1468_v41  ;;  %v34_v41 = vld [vmem:[%s2141_s0 + $0x68] sm:$0xff] }
  0x2b   :  { %846 = vmatpush2.bf16.msra.mxu0 %v1470_v42  ;;  %v28_v42 = vld [vmem:[%s2141_s0 + $0x38] sm:$0xff] }
  0x2c   :  { %889 = vmatpush2.bf16.msra.mxu1 %v1471_v43  ;;  %847 = vmatprep.subr.bf16.mxu0 %v1472_v44  ;;  %v1546_v43 = vld [vmem:[%s2142_s1 + $0x204] ss:$8 sps:$4 sm:$0xff]   ;;  %v44_v49 = vpack.c.bf16 %v36_v46, %v28_v42 }
  0x2d   :  { %890 = vmatprep.subr.bf16.mxu1 %v1474_v45  ;;  %v1549_v44 = vld [vmem:[%s2142_s1 + $0x304] ss:$8 sps:$4 sm:$0xff]   ;;  %v42_v45 = vpack.c.bf16 %v34_v41, %v26_v40  ;;  %v175_v40 = vlaneseq }
  0x2f   :  { %848 = vmatpush2.bf16.msra.mxu0 %v1476_v50  ;;  %v1552_v50 = vld [vmem:[%s2142_s1 + $0x2f4] ss:$8 sps:$4 sm:$0xff]   ;;  %v176_v41 = vshrl.u32 %v175_v40, 7 }
  0x30   :  { %891 = vmatpush2.bf16.msra.mxu1 %v1477_v51  ;;  %849 = vmatprep.subr.bf16.mxu0 %v1478_v52  ;;  %v1555_v51 = vld [vmem:[%s2142_s1 + $0x3f4] ss:$8 sps:$4 sm:$0xff]   ;;  %v1550_v52 = vld [vmem:[%s2142_s1 + $0x2f0] ss:$8 sps:$4 sm:$0xff]  }
  0x31   :  { %892 = vmatprep.subr.bf16.mxu1 %v1480_v55  ;;  %v1561_v55 = vld [vmem:[%s2142_s1 + $0x3e4] ss:$8 sps:$4 sm:$0xff]   ;;  %v177_v46 = vsub.s32 0, %v176_v41 }
  0x33   :  { %850 = vmatpush2.bf16.msra.mxu0 %v1482_v56  ;;  %v1556_v56 = vld [vmem:[%s2142_s1 + $0x2e0] ss:$8 sps:$4 sm:$0xff]  }
  0x34   :  { %893 = vmatpush2.bf16.msra.mxu1 %v1483_v57  ;;  %851 = vmatprep.subr.bf16.mxu0 %v1484_v58  ;;  %v1559_v57 = vld [vmem:[%s2142_s1 + $0x3e0] ss:$8 sps:$4 sm:$0xff]   ;;  %v1564_v58 = vld [vmem:[%s2142_s1 + $0x2d4] ss:$8 sps:$4 sm:$0xff]  }
  0x35   :  { %894 = vmatprep.subr.bf16.mxu1 %v1486_v59  ;;  %v1567_v59 = vld [vmem:[%s2142_s1 + $0x3d4] ss:$8 sps:$4 sm:$0xff]  }
  0x37   :  { %852 = vmatpush2.bf16.msra.mxu0 %v1488_v60  ;;  %v1562_v60 = vld [vmem:[%s2142_s1 + $0x2d0] ss:$8 sps:$4 sm:$0xff]  }
  0x38   :  { %895 = vmatpush2.bf16.msra.mxu1 %v1489_v61  ;;  %853 = vmatprep.subr.bf16.mxu0 %v1490_v62  ;;  %v1565_v61 = vld [vmem:[%s2142_s1 + $0x3d0] ss:$8 sps:$4 sm:$0xff]   ;;  %v1570_v62 = vld [vmem:[%s2142_s1 + $0x2c4] ss:$8 sps:$4 sm:$0xff]  }
  0x39   :  { %896 = vmatprep.subr.bf16.mxu1 %v1492_v63  ;;  %v1573_v63 = vld [vmem:[%s2142_s1 + $0x3c4] ss:$8 sps:$4 sm:$0xff]  }
  0x3b   :  { %854 = vmatpush2.bf16.msra.mxu0 %v1494_v0  ;;  %v1568_v0 = vld [vmem:[%s2142_s1 + $0x2c0] ss:$8 sps:$4 sm:$0xff]  }
  0x3c   :  { %897 = vmatpush2.bf16.msra.mxu1 %v1495_v1  ;;  %855 = vmatprep.subr.bf16.mxu0 %v1496_v2  ;;  %v1571_v1 = vld [vmem:[%s2142_s1 + $0x3c0] ss:$8 sps:$4 sm:$0xff]   ;;  %v1576_v2 = vld [vmem:[%s2142_s1 + $0x2b4] ss:$8 sps:$4 sm:$0xff]  }
  0x3d   :  { %898 = vmatprep.subr.bf16.mxu1 %v1498_v3  ;;  %v1579_v3 = vld [vmem:[%s2142_s1 + $0x3b4] ss:$8 sps:$4 sm:$0xff]  }
  0x3f   :  { %856 = vmatpush2.bf16.msra.mxu0 %v1500_v4  ;;  %v1574_v4 = vld [vmem:[%s2142_s1 + $0x2b0] ss:$8 sps:$4 sm:$0xff]  }
  0x40   :  { %899 = vmatpush2.bf16.msra.mxu1 %v1501_v5  ;;  %911 = vmatprep.subr.bf16.mxu0 %v1504_v10  ;;  %v1577_v5 = vld [vmem:[%s2142_s1 + $0x3b0] ss:$8 sps:$4 sm:$0xff]   ;;  %v1588_v10 = vld [vmem:[%s2142_s1 + $0x294] ss:$8 sps:$4 sm:$0xff]  }
  0x41   :  { %954 = vmatprep.subr.bf16.mxu1 %v1507_v11  ;;  %v1591_v11 = vld [vmem:[%s2142_s1 + $0x394] ss:$8 sps:$4 sm:$0xff]  }
  0x42   :  { %858 = vmatmul.mubr.bf16.vlgmr.msra.gmra.mxu0 %v37_v12  ;;  %v1586_v12 = vld [vmem:[%s2142_s1 + $0x290] ss:$8 sps:$4 sm:$0xff]  }
  0x43   :  { %901 = vmatmul.mubr.bf16.vlgmr.msra.gmra.mxu1 %v39_v13  ;;  %912 = vmatpush1.bf16.msra.mxu0 %v1502_v14  ;;  %v1589_v13 = vld [vmem:[%s2142_s1 + $0x390] ss:$8 sps:$4 sm:$0xff]   ;;  %v1594_v14 = vld [vmem:[%s2142_s1 + $0x284] ss:$8 sps:$4 sm:$0xff]  }
  0x44   :  { %955 = vmatpush1.bf16.msra.mxu1 %v1505_v15  ;;  %913 = vmatprep.subr.bf16.mxu0 %v1510_v16  ;;  %v1597_v15 = vld [vmem:[%s2142_s1 + $0x384] ss:$8 sps:$4 sm:$0xff]   ;;  %v1592_v16 = vld [vmem:[%s2142_s1 + $0x280] ss:$8 sps:$4 sm:$0xff]  }
  0x45   :  { %956 = vmatprep.subr.bf16.mxu1 %v1513_v17  ;;  %943 = vmatprep.mubr.bf16.mxu0 %v42_v45  ;;  %v1595_v17 = vld [vmem:[%s2142_s1 + $0x380] ss:$8 sps:$4 sm:$0xff]  }
  0x46   :  { %986 = vmatprep.mubr.bf16.mxu1 %v44_v49  ;;  %v173_v45 = vld [vmem:[%s2143_s2] sm:$0x3] }
  0x47   :  { %914 = vmatpush1.bf16.msra.mxu0 %v1508_v18  ;;  %v25_v18 = vld [vmem:[%s2141_s0 + $0x20] sm:$0xff] }
  0x48   :  { %957 = vmatpush1.bf16.msra.mxu1 %v1511_v19  ;;  %915 = vmatprep.subr.bf16.mxu0 %v1516_v20  ;;  %v33_v19 = vld [vmem:[%s2141_s0 + $0x60] sm:$0xff]  ;;  %v27_v20 = vld [vmem:[%s2141_s0 + $0x30] sm:$0xff] }
  0x49   :  { %958 = vmatprep.subr.bf16.mxu1 %v1519_v21  ;;  %v35_v21 = vld [vmem:[%s2141_s0 + $0x70] sm:$0xff] }
  0x4b   :  { %916 = vmatpush1.bf16.msra.mxu0 %v1514_v22  ;;  %v41_v22 = vpack.c.bf16 %v33_v19, %v25_v18 }
  0x4c   :  { %959 = vmatpush1.bf16.msra.mxu1 %v1517_v23  ;;  %917 = vmatprep.subr.bf16.mxu0 %v1522_v24  ;;  %v43_v23 = vpack.c.bf16 %v35_v21, %v27_v20  ;;  %v1598_v24 = vld [vmem:[%s2144_s3 + $0x78] sm:$0xff]  }
  0x4d   :  { %960 = vmatprep.subr.bf16.mxu1 %v1525_v25  ;;  %v1599_v25 = vld [vmem:[%s2144_s3 + $0x38] sm:$0xff]  }
  0x4f   :  { %918 = vmatpush1.bf16.msra.mxu0 %v1520_v26  ;;  %v1600_v26 = vld [vmem:[%s2144_s3 + $0x70] sm:$0xff]  }
  0x50   :  { %961 = vmatpush1.bf16.msra.mxu1 %v1523_v27  ;;  %919 = vmatprep.subr.bf16.mxu0 %v1528_v28  ;;  %v1601_v27 = vld [vmem:[%s2144_s3 + $0x30] sm:$0xff]   ;;  %v1602_v28 = vld [vmem:[%s2144_s3 + $0x68] sm:$0xff]  }
  0x51   :  { %962 = vmatprep.subr.bf16.mxu1 %v1531_v29  ;;  %v1603_v29 = vld [vmem:[%s2144_s3 + $0x28] sm:$0xff]  }
  0x53   :  { %920 = vmatpush1.bf16.msra.mxu0 %v1526_v30  ;;  %v1604_v30 = vld [vmem:[%s2144_s3 + $0x60] sm:$0xff]  }
  0x54   :  { %963 = vmatpush1.bf16.msra.mxu1 %v1529_v31  ;;  %921 = vmatprep.subr.bf16.mxu0 %v1534_v32  ;;  %v1605_v31 = vld [vmem:[%s2144_s3 + $0x20] sm:$0xff]   ;;  %v1606_v32 = vld [vmem:[%s2144_s3 + $0x58] sm:$0xff]  }
  0x55   :  { %964 = vmatprep.subr.bf16.mxu1 %v1537_v33  ;;  %v1607_v33 = vld [vmem:[%s2144_s3 + $0x18] sm:$0xff]  }
  0x57   :  { %922 = vmatpush1.bf16.msra.mxu0 %v1532_v34  ;;  %v1608_v34 = vld [vmem:[%s2144_s3 + $0x50] sm:$0xff]  }
  0x58   :  { %965 = vmatpush1.bf16.msra.mxu1 %v1535_v35  ;;  %923 = vmatprep.subr.bf16.mxu0 %v1540_v36  ;;  %v1609_v35 = vld [vmem:[%s2144_s3 + $0x10] sm:$0xff]   ;;  %v1610_v36 = vld [vmem:[%s2144_s3 + $0x48] sm:$0xff]  }
  0x59   :  { %966 = vmatprep.subr.bf16.mxu1 %v1543_v37  ;;  %v1611_v37 = vld [vmem:[%s2144_s3 + $0x8] sm:$0xff]  }
  0x5b   :  { %924 = vmatpush1.bf16.msra.mxu0 %v1538_v38  ;;  %v1612_v38 = vld [vmem:[%s2144_s3 + $0x40] sm:$0xff]  }
  0x5c   :  { %967 = vmatpush1.bf16.msra.mxu1 %v1541_v39  ;;  %925 = vmatprep.subr.bf16.mxu0 %v1546_v43  ;;  %v1613_v39 = vld [vmem:[%s2144_s3] sm:$0xff]  }
  0x5d   :  { %968 = vmatprep.subr.bf16.mxu1 %v1549_v44  ;;  %v181_v44 = vsub.s32 1, %v176_v41 }
  0x5f   :  { %926 = vmatpush1.bf16.msra.mxu0 %v1544_v47  ;;  %v182_v49 = vrot.slane %v173_v45, %v181_v44 }
  0x60   :  { %969 = vmatpush1.bf16.msra.mxu1 %v1547_v48  ;;  %927 = vmatprep.subr.bf16.mxu0 %v1552_v50  ;;  %v178_v50 = vrot.slane %v173_v45, %v177_v46 }
  0x61   :  { %970 = vmatprep.subr.bf16.mxu1 %v1555_v51 }
  0x63   :  { %928 = vmatpush2.bf16.msra.mxu0 %v1550_v52 }
  0x64   :  { %971 = vmatpush2.bf16.msra.mxu1 %v1553_v53  ;;  %929 = vmatprep.subr.bf16.mxu0 %v1558_v54 }
  0x65   :  { %972 = vmatprep.subr.bf16.mxu1 %v1561_v55 }
  0x67   :  { %930 = vmatpush2.bf16.msra.mxu0 %v1556_v56 }
  0x68   :  { %973 = vmatpush2.bf16.msra.mxu1 %v1559_v57  ;;  %931 = vmatprep.subr.bf16.mxu0 %v1564_v58 }
  0x69   :  { %974 = vmatprep.subr.bf16.mxu1 %v1567_v59 }
  0x6b   :  { %932 = vmatpush2.bf16.msra.mxu0 %v1562_v60 }
  0x6c   :  { %975 = vmatpush2.bf16.msra.mxu1 %v1565_v61  ;;  %933 = vmatprep.subr.bf16.mxu0 %v1570_v62 }
  0x6d   :  { %976 = vmatprep.subr.bf16.mxu1 %v1573_v63 }
  0x6f   :  { %934 = vmatpush2.bf16.msra.mxu0 %v1568_v0 }
  0x70   :  { %977 = vmatpush2.bf16.msra.mxu1 %v1571_v1  ;;  %935 = vmatprep.subr.bf16.mxu0 %v1576_v2 }
  0x71   :  { %978 = vmatprep.subr.bf16.mxu1 %v1579_v3 }
  0x73   :  { %936 = vmatpush2.bf16.msra.mxu0 %v1574_v4 }
  0x74   :  { %979 = vmatpush2.bf16.msra.mxu1 %v1577_v5  ;;  %937 = vmatprep.subr.bf16.mxu0 %v1582_v6 }
  0x75   :  { %980 = vmatprep.subr.bf16.mxu1 %v1585_v7 }
  0x77   :  { %938 = vmatpush2.bf16.msra.mxu0 %v1580_v8 }
  0x78   :  { %981 = vmatpush2.bf16.msra.mxu1 %v1583_v9  ;;  %939 = vmatprep.subr.bf16.mxu0 %v1588_v10 }
  0x79   :  { %982 = vmatprep.subr.bf16.mxu1 %v1591_v11 }
  0x7b   :  { %940 = vmatpush2.bf16.msra.mxu0 %v1586_v12 }
  0x7c   :  { %983 = vmatpush2.bf16.msra.mxu1 %v1589_v13  ;;  %941 = vmatprep.subr.bf16.mxu0 %v1594_v14 }
  0x7d   :  { %984 = vmatprep.subr.bf16.mxu1 %v1597_v15 }
  0x7f   :  { %942 = vmatpush2.bf16.msra.mxu0 %v1592_v16 }
  0x80   :  { %985 = vmatpush2.bf16.msra.mxu1 %v1595_v17  ;;  %1384 = vmatprep.subr.bf16.mxu0 %v1598_v24 }
  0x82   :  { %944 = vmatmul.mubr.bf16.vlgmr.msra.gmra.mxu0 %v41_v22 }
  0x83   :  { %987 = vmatmul.mubr.bf16.vlgmr.msra.gmra.mxu1 %v43_v23  ;;  %1385 = vmatpush3.bf16.msra.mxu0 %v1599_v25  ;;  %v1358_v25 = vld [vmem:[%s2145_s4] ss:$0 sm:$0xff] }
  0x84   :  { %1386 = vmatprep.subr.bf16.mxu0 %v1600_v26 }
  0x87   :  { %1387 = vmatpush3.bf16.msra.mxu0 %v1601_v27 }
  0x88   :  { %1388 = vmatprep.subr.bf16.mxu0 %v1602_v28 }
  0x8b   :  { %1389 = vmatpush3.bf16.msra.mxu0 %v1603_v29 }
  0x8c   :  { %1390 = vmatprep.subr.bf16.mxu0 %v1604_v30 }
  0x8f   :  { %1391 = vmatpush3.bf16.msra.mxu0 %v1605_v31 }
  0x90   :  { %1392 = vmatprep.subr.bf16.mxu0 %v1606_v32 }
  0x93   :  { %1393 = vmatpush3.bf16.msra.mxu0 %v1607_v33 }
  0x94   :  { %1394 = vmatprep.subr.bf16.mxu0 %v1608_v34 }
  0x97   :  { %1395 = vmatpush3.bf16.msra.mxu0 %v1609_v35 }
  0x98   :  { %1396 = vmatprep.subr.bf16.mxu0 %v1610_v36 }
  0x9b   :  { %1397 = vmatpush3.bf16.msra.mxu0 %v1611_v37 }
  0x9c   :  { %1398 = vmatprep.subr.bf16.mxu0 %v1612_v38 }
  0x9f   :  { %1399 = vmatpush3.bf16.msra.mxu0 %v1613_v39 }
 0x102   :  { %v859_v42 = vpop.f32.mrf.mxu0 }
 0x103   :  { %v902_v43 = vpop.f32.mrf.mxu1  ;;  %v860_v54 = vadd.f32 %v859_v42, %v178_v50 }
 0x104   :  { %v861_v47 = vpop.f32.mrf.mxu0 }
 0x105   :  { %v904_v48 = vpop.f32.mrf.mxu1  ;;  %v862_v53 = vadd.f32 %v861_v47, %v182_v49  ;;  %v903_v62 = vadd.f32 %v902_v43, %v860_v54 }
 0x106   :  { %v863_v51 = vpop.f32.mrf.mxu0 }
 0x107   :  { %v906_v52 = vpop.f32.mrf.mxu1  ;;  %v864_v57 = vadd.f32 %v863_v51, %v178_v50  ;;  %v905_v60 = vadd.f32 %v904_v48, %v862_v53 }
 0x108   :  { %v865_v55 = vpop.f32.mrf.mxu0 }
 0x109   :  { %v908_v56 = vpop.f32.mrf.mxu1  ;;  %v866_v61 = vadd.f32 %v865_v55, %v182_v49  ;;  %v907_v1 = vadd.f32 %v906_v52, %v864_v57 }
 0x10b   :  { %v909_v6 = vadd.f32 %v908_v56, %v866_v61 }
 0x142   :  { %v945_v58 = vpop.f32.mrf.mxu0 }
 0x143   :  { %v988_v59 = vpop.f32.mrf.mxu1  ;;  %v946_v3 = vadd.f32 %v945_v58, %v903_v62 }
 0x144   :  { %v947_v63 = vpop.f32.mrf.mxu0 }
 0x145   :  { %v990_v0 = vpop.f32.mrf.mxu1  ;;  %v948_v2 = vadd.f32 %v947_v63, %v905_v60  ;;  %v989_v12 = vadd.f32 %v988_v59, %v946_v3 }
 0x146   :  { %v949_v4 = vpop.f32.mrf.mxu0 }
 0x147   :  { %v992_v5 = vpop.f32.mrf.mxu1  ;;  %v991_v7 = vadd.f32 %v990_v0, %v948_v2  ;;  %v950_v8 = vadd.f32 %v949_v4, %v907_v1 }
 0x148   :  { %v951_v9 = vpop.f32.mrf.mxu0 }
 0x149   :  { %v993_v10 = vadd.f32 %v992_v5, %v950_v8  ;;  %v952_v11 = vadd.f32 %v951_v9, %v909_v6  ;;  %v994_v13 = vpop.f32.mrf.mxu1  ;;  %1614 = vtanh.f32 %v991_v7 }
 0x14b   :  { %v995_v14 = vadd.f32 %v994_v13, %v952_v11  ;;  %1616 = vtanh.f32 %v993_v10 }
 0x14d   :  { %1618 = vtanh.f32 %v995_v14 }
 0x14e   :  { %1620 = vtanh.f32 %v989_v12 }
 0x156   :  { %v1615_v15 = vpop.eup %1614 }
 0x158   :  { %v1617_v16 = vpop.eup %1616 }
 0x15a   :  { %v1619_v17 = vpop.eup %1618 }
 0x15b   :  { %v1621_v18 = vpop.eup %1620  ;;  %v1002_v19 = vpack.c.bf16 %v1619_v17, %v1615_v15 }
 0x15c   :  { %v1001_v20 = vpack.c.bf16 %v1617_v16, %v1621_v18 }
 0x15d   :  { %1170 = vmatprep.mubr.bf16.mxu0 %v1002_v19 }
 0x15e   :  { %1171 = vmatmul.mubr.bf16.vlgmr.msra.gmra.mxu0 %v1001_v20 }
 0x21e   :  { %v1400_v21 = vpop.f32.mrf.mxu0 }
 0x220   :  { %v1401_v22 = vpop.f32.mrf.mxu0 }
 0x221   :  { %v1402_v24 = vadd.f32 %v1401_v22, %v1400_v21 }
 0x222   :  { %v1403_v23 = vpop.f32.mrf.mxu0 }
 0x223   :  { %v1173_v28 = vadd.f32 %v1402_v24, %v1358_v25 }
 0x224   :  { %v1404_v26 = vpop.f32.mrf.mxu0 }
 0x225   :  { %v1405_v27 = vadd.f32 %v1404_v26, %v1403_v23 }
 0x227   :  { %v1176_v29 = vadd.f32 %v1405_v27, %v1358_v25 }
 0x229   :  { %v1382_v30 = vpack.c.bf16 %v1176_v29, %v1173_v28 }
 0x22b   :  { %1383 = vst [vmem:[#allocation2] sm:$0xff] %v1382_v30  }
 0x232   :  { %v1207_v31 = vld [vmem:[#allocation2] sm:$0xf] }
 0x233   :  { %1208 = vst [vmem:[%s2146_s5] sm:$0xf] %v1207_v31 }

</bundles_post_ra>
